<compile_context>
chip_gen: v5e
topology: v5e:2x2
jax: 0.10.0
libtpu: 0.0.40
codegen_flags: <defaults>
</compile_context>

<pallas_src>
import functools
import math

import jax
import jax.numpy as jnp
from jax.experimental import pallas as pl
from jax.experimental.pallas import tpu as pltpu


# ------------------------------ helpers -------------------------------------


def _round_up(v: int, m: int) -> int:
    return (v + m - 1) // m * m


@functools.lru_cache(maxsize=1)
def _chip_info():
    """Best-effort (vmem_capacity_bytes, mxu_width, num_tensorcores)."""
    vmem = 64 * 1024 * 1024            # conservative default (v7x floor)
    mxu = 256
    n_tc = 1
    try:
        info = pltpu.get_tpu_info()
        cap = getattr(info, "vmem_capacity_bytes", None)
        if cap:
            vmem = int(cap)
    except Exception:
        pass
    try:
        kind = jax.devices()[0].device_kind.lower()
        # v2-v5 generations have 128-wide MXUs; v6e/v7x are 256-wide.
        if any(v in kind for v in ("v2", "v3", "v4", "v5")):
            mxu = 128
        if "v7" in kind or "tpu7" in kind:
            n_tc = 2                    # two TensorCores per chip on v7x
    except Exception:
        pass
    return vmem, mxu, n_tc


def _vmem_budget(vmem_cap: int):
    """(working-set budget, vmem_limit_bytes) derived from physical VMEM."""
    vmem_limit = min(int(vmem_cap * 0.75), 96 * 1024 * 1024)
    vmem_limit = max(vmem_limit, 16 * 1024 * 1024)
    ws_budget = int(vmem_limit * 0.70)
    return ws_budget, vmem_limit


# ------------------------------ kernel --------------------------------------


def _make_kernel(has_trainable: bool, has_bias: bool, nkf: int):
    """Build the matmul kernel; grid axis 2 = fixed-K chunks then trainable-K."""

    def kernel(*refs):
        refs = list(refs)
        xf_ref = refs.pop(0)
        wf_ref = refs.pop(0)
        xt_ref = wt_ref = b_ref = None
        if has_trainable:
            xt_ref = refs.pop(0)
            wt_ref = refs.pop(0)
        if has_bias:
            b_ref = refs.pop(0)
        o_ref = refs.pop(0)
        acc_ref = refs.pop(0)

        k = pl.program_id(2)

        @pl.when(k == 0)
        def _init():
            if has_bias:
                # Fold the bias add into the accumulator init.
                acc_ref[...] = jnp.broadcast_to(
                    b_ref[...].astype(jnp.float32), acc_ref.shape)
            else:
                acc_ref[...] = jnp.zeros_like(acc_ref)

        if has_trainable:
            @pl.when(k < nkf)
            def _fixed_part():
                acc_ref[...] += jnp.dot(xf_ref[...], wf_ref[...],
                                        preferred_element_type=jnp.float32)

            @pl.when(k >= nkf)
            def _trainable_part():
                acc_ref[...] += jnp.dot(xt_ref[...], wt_ref[...],
                                        preferred_element_type=jnp.float32)
        else:
            acc_ref[...] += jnp.dot(xf_ref[...], wf_ref[...],
                                    preferred_element_type=jnp.float32)

        @pl.when(k == pl.num_programs(2) - 1)
        def _writeback():
            o_ref[...] = acc_ref[...].astype(o_ref.dtype)

    return kernel


# --------------------------- tile selection ----------------------------------


def _select_tiles(B, Kf, Kt, O, isz, osz, *, tm=None, tn=None, tk=None):
    """Pick (tm, tn, per-part K tiles) under a generation-aware VMEM budget."""
    vmem_cap, mxu, n_tc = _chip_info()
    ws_budget, vmem_limit = _vmem_budget(vmem_cap)

    pack = max(8, 32 // isz)            # sublane packing: 8 f32, 16 bf16, 32 i8
    user_tm, user_tn = tm is not None, tn is not None

    # --- M tile: up to 512, balanced across M tiles to limit padding waste.
    if tm is None:
        n_m = -(-B // 512)
        tm = min(_round_up(-(-B // n_m), pack), 512)
    Mp = _round_up(B, tm)

    # --- N tile: lane-dense, 256-aligned for the 256-wide MXU when possible,
    #     exact divisor of O when O is a 128-multiple (no weight/output pad).
    if tn is None:
        if O % 128 != 0 and O <= 1024:
            tn, Np = O, O               # full-N block: legal, avoids padding
        else:
            Np = _round_up(O, 128)
            tn = max(d for d in (512, 256, 128) if Np % d == 0)
    else:
        Np = _round_up(O, tn)

    # --- K chunk cap from the double-buffered working-set budget.
    k_align = 256 if mxu >= 256 else 128
    if tk is None:
        fixed_bytes = 2 * tm * tn * osz + tm * tn * 4 + 2 * tn * 4
        rem = max(ws_budget - fixed_bytes, 0)
        per_k = 2 * (tm + tn) * isz     # x-block + w-block, double buffered
        parts = 2 if Kt > 0 else 1
        cap = rem // (per_k * parts) if per_k else 128
        tk = min(2048, max(128, (cap // 128) * 128))

    def pick_k(K):
        if K <= 0:
            return 0, 0, 0
        if K <= tk:
            return K, K, 1              # single full-K block: no host-side pad
        t = max(128, (tk // k_align) * k_align)
        Kp = _round_up(K, t)
        return t, Kp, Kp // t

    tkf, Kf_p, nkf = pick_k(Kf)
    tkt, Kt_p, nkt = pick_k(Kt)

    # --- v7x megacore: guarantee >= 2 parallel (M, N) grid tiles.
    if n_tc >= 2 and (Mp // tm) * (Np // tn) < 2:
        if not user_tn and tn % 256 == 0 and Np % (tn // 2) == 0:
            tn //= 2
        elif not user_tm and tm >= 2 * pack:
            tm = _round_up(tm // 2, pack)
            Mp = _round_up(B, tm)

    return tm, Mp, tn, Np, tkf, Kf_p, nkf, tkt, Kt_p, nkt, vmem_limit


# ------------------------------- wrapper --------------------------------------


def input_partly_trainable_linear(x, w_fixed, w_trainable, bias, *,
                                  tm=None, tn=None, tk=None,
                                  compute_dtype=None, force_pallas=False):
    """Pallas forward of InputPartlyTrainableLinear.

    Args:
      x: [B, I] input, I = n_fixed_input + n_trainable_input.
      w_fixed: [n_fixed_input, O]   (transposed vs PyTorch's [O, I_fixed]).
      w_trainable: [n_trainable_input, O] or None.
      bias: [O] or None (trainable.bias / trainable_bias).
      tm, tn, tk: optional tile overrides (tk caps each K part's chunk size).
      compute_dtype: optional MXU operand dtype (e.g. jnp.bfloat16); the
        accumulator stays float32 and the output keeps x.dtype.
      force_pallas: skip the tiny-shape XLA fallback (used by tests).
    Returns:
      [B, O] output in x.dtype.
    """
    B, I = x.shape
    Kf, O = w_fixed.shape
    Kt = 0 if w_trainable is None else w_trainable.shape[0]
    assert I == Kf + Kt, "input dim must equal n_fixed + n_trainable"

    # Degenerate all-trainable case: identical math with a single weight.
    if Kf == 0 and Kt > 0:
        w_fixed, w_trainable = w_trainable, None
        Kf, Kt = Kt, 0

    _, mxu, _ = _chip_info()
    flops = 2 * B * I * O
    # Tiny-problem fallback: Pallas call/step overhead dwarfs the dot.  The
    # crossover sits further out on the faster-HBM/wider-MXU v6e/v7x.
    if not force_pallas and flops < ((1 << 20) if mxu < 256 else (1 << 21)):
        out = jnp.dot(x[:, :Kf], w_fixed, preferred_element_type=jnp.float32)
        if Kt > 0:
            out = out + jnp.dot(x[:, Kf:], w_trainable,
                                preferred_element_type=jnp.float32)
        if bias is not None:
            out = out + bias.astype(jnp.float32)
        return out.astype(x.dtype)

    op_dtype = jnp.dtype(compute_dtype) if compute_dtype is not None else x.dtype
    isz = op_dtype.itemsize
    osz = x.dtype.itemsize

    (tm, Mp, tn, Np, tkf, Kf_p, nkf, tkt, Kt_p, nkt,
     vmem_limit) = _select_tiles(B, Kf, Kt, O, isz, osz, tm=tm, tn=tn, tk=tk)

    def pad2(a, rows, cols):
        r, c = a.shape
        if r == rows and c == cols:
            return a
        return jnp.pad(a, ((0, rows - r), (0, cols - c)))

    def prep(a, rows, cols):
        a = pad2(a, rows, cols)
        return a.astype(op_dtype) if a.dtype != op_dtype else a

    xf = prep(x[:, :Kf], Mp, Kf_p)
    wf = prep(w_fixed, Kf_p, Np)

    # Fixed part active for k < nkf; its block index is clamped afterwards so
    # the (unused) blocks are never re-fetched.  Symmetric for the trainable
    # part with max(k - nkf, 0).
    in_specs = [
        pl.BlockSpec((tm, tkf), lambda i, j, k: (i, jnp.minimum(k, nkf - 1))),
        pl.BlockSpec((tkf, tn), lambda i, j, k: (jnp.minimum(k, nkf - 1), j)),
    ]
    args = [xf, wf]

    if Kt > 0:
        xt = prep(x[:, Kf:], Mp, Kt_p)
        wt = prep(w_trainable, Kt_p, Np)
        in_specs += [
            pl.BlockSpec((tm, tkt), lambda i, j, k: (i, jnp.maximum(k - nkf, 0))),
            pl.BlockSpec((tkt, tn), lambda i, j, k: (jnp.maximum(k - nkf, 0), j)),
        ]
        args += [xt, wt]

    if bias is not None:
        args += [pad2(bias.reshape(1, O), 1, Np)]
        in_specs += [pl.BlockSpec((1, tn), lambda i, j, k: (0, j))]

    grid = (Mp // tm, Np // tn, nkf + nkt)
    kernel = _make_kernel(Kt > 0, bias is not None, nkf)

    cost = pl.CostEstimate(
        flops=flops,
        transcendentals=0,
        bytes_accessed=(B * I + I * O) * isz + B * O * osz
        + (O * bias.dtype.itemsize if bias is not None else 0),
    )

    out = pl.pallas_call(
        kernel,
        out_shape=jax.ShapeDtypeStruct((Mp, Np), x.dtype),
        grid_spec=pltpu.PrefetchScalarGridSpec(
            num_scalar_prefetch=0,
            grid=grid,
            in_specs=in_specs,
            out_specs=pl.BlockSpec((tm, tn), lambda i, j, k: (i, j)),
            scratch_shapes=[pltpu.VMEM((tm, tn), jnp.float32)],
        ),
        compiler_params=pltpu.CompilerParams(
            dimension_semantics=("parallel", "parallel", "arbitrary"),
            vmem_limit_bytes=vmem_limit,
        ),
        cost_estimate=cost,
    )(*args)

    if Mp != B or Np != O:
        out = out[:B, :O]
    return out


# --------------------------- deterministic init -------------------------------


def init_params(key, n_fixed_input, n_output, n_trainable_input, bias=True):
    """Mimics nn.Linear init (uniform +/- 1/sqrt(fan_in)) deterministically."""
    k1, k2, k3, k4 = jax.random.split(key, 4)
    bound_f = 1.0 / math.sqrt(max(n_fixed_input, 1))
    w_fixed = jax.random.uniform(k1, (n_fixed_input, n_output), jnp.float32,
                                 -bound_f, bound_f)
    if n_trainable_input > 0:
        bound_t = 1.0 / math.sqrt(n_trainable_input)
        w_trainable = jax.random.uniform(
            k2, (n_trainable_input, n_output), jnp.float32, -bound_t, bound_t)
        b = (jax.random.uniform(k3, (n_output,), jnp.float32, -bound_t, bound_t)
             if bias else None)
    else:
        w_trainable = None
        b = (jax.random.uniform(k4, (n_output,), jnp.float32, -bound_f, bound_f)
             if bias else None)
    return w_fixed, w_trainable, b


def reference(x, w_fixed, w_trainable, bias):
    """Pure-JAX reference matching the PyTorch forward (two separate dots)."""
    n_fixed = w_fixed.shape[0]
    if w_trainable is not None:
        out = x[:, :n_fixed] @ w_fixed
        out = out + x[:, n_fixed:] @ w_trainable
        if bias is not None:
            out = out + bias
        return out
    out = x @ w_fixed
    if bias is not None:
        out = out + bias
    return out


# --------------------------------- main ---------------------------------------


if __name__ == "__main__":
    key = jax.random.PRNGKey(0)
    kx1, kx2, kx3, kp1, kp2, kp3, kp4, kp5 = jax.random.split(key, 8)

    # Case 1: n_trainable_input > 0, bias=True (trainable Linear with bias).
    B, n_fixed, n_trainable, n_out = 8, 24, 8, 32
    x = jax.random.normal(kx1, (B, n_fixed + n_trainable), jnp.float32)
    wf, wt, b = init_params(kp1, n_fixed, n_out, n_trainable, bias=True)
    y1 = jax.block_until_ready(
        input_partly_trainable_linear(x, wf, wt, b, force_pallas=True))
    assert jnp.allclose(y1, reference(x, wf, wt, b),
                        atol=1e-4, rtol=1e-5), "case1 mismatch"

    # Case 2: n_trainable_input == 0, bias=True (fixed linear + trainable_bias).
    wf2, wt2, b2 = init_params(kp2, n_fixed + n_trainable, n_out, 0, bias=True)
    y2 = jax.block_until_ready(
        input_partly_trainable_linear(x, wf2, wt2, b2, force_pallas=True))
    assert jnp.allclose(y2, reference(x, wf2, wt2, b2),
                        atol=1e-4, rtol=1e-5), "case2 mismatch"

    # Case 3: n_trainable_input == 0, bias=False (fixed only, no-bias kernel).
    wf3, wt3, b3 = init_params(kp3, n_fixed + n_trainable, n_out, 0, bias=False)
    y3 = jax.block_until_ready(
        input_partly_trainable_linear(x, wf3, wt3, b3, force_pallas=True))
    assert jnp.allclose(y3, reference(x, wf3, wt3, b3),
                        atol=1e-4, rtol=1e-5), "case3 mismatch"

    # Case 4: multi-step K reduction on the fixed part (tk=128 -> 2 chunks)
    # plus a single-chunk trainable part; exercises the clamped index maps,
    # the K-padding path and the bias-folded accumulator init.
    B4, nf4, nt4, O4 = 64, 192, 64, 256
    x4 = jax.random.normal(kx2, (B4, nf4 + nt4), jnp.float32)
    wf4, wt4, b4 = init_params(kp4, nf4, O4, nt4, bias=True)
    y4 = jax.block_until_ready(
        input_partly_trainable_linear(x4, wf4, wt4, b4,
                                      tk=128, force_pallas=True))
    assert jnp.allclose(y4, reference(x4, wf4, wt4, b4),
                        atol=1e-4, rtol=1e-5), "case4 mismatch"

    # Case 5: lane-aligned shapes exercising the zero-padding fast path and the
    # optional bf16 MXU operand cast (f32 accumulation); compared against the
    # reference evaluated on the same bf16-rounded operands.
    B5, nf5, nt5, O5 = 32, 256, 128, 256
    x5 = jax.random.normal(kx3, (B5, nf5 + nt5), jnp.float32)
    wf5, wt5, b5 = init_params(kp5, nf5, O5, nt5, bias=True)
    y5 = jax.block_until_ready(
        input_partly_trainable_linear(x5, wf5, wt5, b5,
                                      compute_dtype=jnp.bfloat16,
                                      force_pallas=True))
    bf = lambda a: a.astype(jnp.bfloat16).astype(jnp.float32)
    ref5 = reference(bf(x5), bf(wf5), bf(wt5), b5)
    assert jnp.allclose(y5, ref5, atol=2e-2, rtol=2e-2), "case5 mismatch"

    print("KERNEL_OK")
</pallas_src>

<mosaic_0001>
module attributes {stable_mosaic.version = 11 : i64} {
  func.func @kernel(%arg0: i32, %arg1: i32, %arg2: i32, %arg3: memref<8x24xf32, #tpu.memory_space<vmem>>, %arg4: memref<24x32xf32, #tpu.memory_space<vmem>>, %arg5: memref<8x8xf32, #tpu.memory_space<vmem>>, %arg6: memref<8x32xf32, #tpu.memory_space<vmem>>, %arg7: memref<1x32xf32, #tpu.memory_space<vmem>>, %arg8: memref<8x32xf32, #tpu.memory_space<vmem>>, %arg9: memref<8x32xf32, #tpu.memory_space<vmem>>) attributes {dimension_semantics = [#tpu.dimension_semantics<parallel>, #tpu.dimension_semantics<parallel>, #tpu.dimension_semantics<arbitrary>], iteration_bounds = array<i64: 1, 1, 2>, scalar_prefetch = 0 : i64, scratch_operands = 1 : i64, tpu.core_type = #tpu.core_type<tc>, window_params = [{transform_indices = @transform_0, window_bounds = array<i64: 8, 24>}, {transform_indices = @transform_1, window_bounds = array<i64: 24, 32>}, {transform_indices = @transform_2, window_bounds = array<i64: 8, 8>}, {transform_indices = @transform_3, window_bounds = array<i64: 8, 32>}, {transform_indices = @transform_4, window_bounds = array<i64: 1, 32>}, {transform_indices = @transform_5, window_bounds = array<i64: 8, 32>}]} {
    %c0_i32 = arith.constant 0 : i32
    %0 = arith.cmpi eq, %arg2, %c0_i32 : i32
    %1 = arith.extui %0 : i1 to i32
    %c0_i32_0 = arith.constant 0 : i32
    %2 = arith.cmpi ne, %1, %c0_i32_0 : i32
    scf.if %2 {
      %c0 = arith.constant 0 : index
      %c0_6 = arith.constant 0 : index
      %12 = vector.load %arg7[%c0, %c0_6] : memref<1x32xf32, #tpu.memory_space<vmem>>, vector<1x32xf32>
      %13 = vector.shape_cast %12 : vector<1x32xf32> to vector<1x32xf32>
      %14 = vector.broadcast %13 : vector<1x32xf32> to vector<8x32xf32>
      %c0_7 = arith.constant 0 : index
      %c0_8 = arith.constant 0 : index
      %15 = vector.load %arg9[%c0_7, %c0_8] : memref<8x32xf32, #tpu.memory_space<vmem>>, vector<8x32xf32>
      tpu.vector_store %arg9[%c0_7, %c0_8], %14 {strides = array<i32>} : memref<8x32xf32, #tpu.memory_space<vmem>>, vector<8x32xf32>,
    } else {
    }
    %c1_i32 = arith.constant 1 : i32
    %3 = arith.cmpi slt, %arg2, %c1_i32 : i32
    %4 = arith.extui %3 : i1 to i32
    %c0_i32_1 = arith.constant 0 : i32
    %5 = arith.cmpi ne, %4, %c0_i32_1 : i32
    scf.if %5 {
      %c0 = arith.constant 0 : index
      %c0_6 = arith.constant 0 : index
      %12 = vector.load %arg9[%c0, %c0_6] : memref<8x32xf32, #tpu.memory_space<vmem>>, vector<8x32xf32>
      %c0_7 = arith.constant 0 : index
      %c0_8 = arith.constant 0 : index
      %13 = vector.load %arg3[%c0_7, %c0_8] : memref<8x24xf32, #tpu.memory_space<vmem>>, vector<8x24xf32>
      %c0_9 = arith.constant 0 : index
      %c0_10 = arith.constant 0 : index
      %14 = vector.load %arg4[%c0_9, %c0_10] : memref<24x32xf32, #tpu.memory_space<vmem>>, vector<24x32xf32>
      %cst = arith.constant dense<0.000000e+00> : vector<8x32xf32>
      %15 = tpu.matmul %13, %14, %cst {dimension_numbers = #tpu.dot_dimension_numbers<[1], [0], [0], [1], [0, 0, 1, 1], [], []>} : vector<8x24xf32>, vector<24x32xf32>, vector<8x32xf32> -> vector<8x32xf32>
      %16 = arith.addf %12, %15 : vector<8x32xf32>
      %c0_11 = arith.constant 0 : index
      %c0_12 = arith.constant 0 : index
      %17 = vector.load %arg9[%c0_11, %c0_12] : memref<8x32xf32, #tpu.memory_space<vmem>>, vector<8x32xf32>
      tpu.vector_store %arg9[%c0_11, %c0_12], %16 {strides = array<i32>} : memref<8x32xf32, #tpu.memory_space<vmem>>, vector<8x32xf32>,
    } else {
    }
    %c1_i32_2 = arith.constant 1 : i32
    %6 = arith.cmpi sge, %arg2, %c1_i32_2 : i32
    %7 = arith.extui %6 : i1 to i32
    %c0_i32_3 = arith.constant 0 : i32
    %8 = arith.cmpi ne, %7, %c0_i32_3 : i32
    scf.if %8 {
      %c0 = arith.constant 0 : index
      %c0_6 = arith.constant 0 : index
      %12 = vector.load %arg9[%c0, %c0_6] : memref<8x32xf32, #tpu.memory_space<vmem>>, vector<8x32xf32>
      %c0_7 = arith.constant 0 : index
      %c0_8 = arith.constant 0 : index
      %13 = vector.load %arg5[%c0_7, %c0_8] : memref<8x8xf32, #tpu.memory_space<vmem>>, vector<8x8xf32>
      %c0_9 = arith.constant 0 : index
      %c0_10 = arith.constant 0 : index
      %14 = vector.load %arg6[%c0_9, %c0_10] : memref<8x32xf32, #tpu.memory_space<vmem>>, vector<8x32xf32>
      %cst = arith.constant dense<0.000000e+00> : vector<8x32xf32>
      %15 = tpu.matmul %13, %14, %cst {dimension_numbers = #tpu.dot_dimension_numbers<[1], [0], [0], [1], [0, 0, 1, 1], [], []>} : vector<8x8xf32>, vector<8x32xf32>, vector<8x32xf32> -> vector<8x32xf32>
      %16 = arith.addf %12, %15 : vector<8x32xf32>
      %c0_11 = arith.constant 0 : index
      %c0_12 = arith.constant 0 : index
      %17 = vector.load %arg9[%c0_11, %c0_12] : memref<8x32xf32, #tpu.memory_space<vmem>>, vector<8x32xf32>
      tpu.vector_store %arg9[%c0_11, %c0_12], %16 {strides = array<i32>} : memref<8x32xf32, #tpu.memory_space<vmem>>, vector<8x32xf32>,
    } else {
    }
    %c1_i32_4 = arith.constant 1 : i32
    %9 = arith.cmpi eq, %arg2, %c1_i32_4 : i32
    %10 = arith.extui %9 : i1 to i32
    %c0_i32_5 = arith.constant 0 : i32
    %11 = arith.cmpi ne, %10, %c0_i32_5 : i32
    scf.if %11 {
      %c0 = arith.constant 0 : index
      %c0_6 = arith.constant 0 : index
      %12 = vector.load %arg9[%c0, %c0_6] : memref<8x32xf32, #tpu.memory_space<vmem>>, vector<8x32xf32>
      %c0_7 = arith.constant 0 : index
      %c0_8 = arith.constant 0 : index
      %13 = vector.load %arg8[%c0_7, %c0_8] : memref<8x32xf32, #tpu.memory_space<vmem>>, vector<8x32xf32>
      tpu.vector_store %arg8[%c0_7, %c0_8], %12 {strides = array<i32>} : memref<8x32xf32, #tpu.memory_space<vmem>>, vector<8x32xf32>,
    } else {
    }
    return
  }
  func.func @transform_0(%arg0: i32, %arg1: i32, %arg2: i32) -> (i32, i32) {
    %c0_i32 = arith.constant 0 : i32
    %0 = arith.minsi %arg2, %c0_i32 : i32
    %c0_i32_0 = arith.constant 0 : i32
    return %arg0, %0 : i32, i32
  }
  func.func @transform_1(%arg0: i32, %arg1: i32, %arg2: i32) -> (i32, i32) {
    %c0_i32 = arith.constant 0 : i32
    %0 = arith.minsi %arg2, %c0_i32 : i32
    %c0_i32_0 = arith.constant 0 : i32
    return %0, %arg1 : i32, i32
  }
  func.func @transform_2(%arg0: i32, %arg1: i32, %arg2: i32) -> (i32, i32) {
    %c1_i32 = arith.constant 1 : i32
    %0 = arith.subi %arg2, %c1_i32 : i32
    %c0_i32 = arith.constant 0 : i32
    %1 = arith.maxsi %0, %c0_i32 : i32
    %c0_i32_0 = arith.constant 0 : i32
    return %arg0, %1 : i32, i32
  }
  func.func @transform_3(%arg0: i32, %arg1: i32, %arg2: i32) -> (i32, i32) {
    %c1_i32 = arith.constant 1 : i32
    %0 = arith.subi %arg2, %c1_i32 : i32
    %c0_i32 = arith.constant 0 : i32
    %1 = arith.maxsi %0, %c0_i32 : i32
    %c0_i32_0 = arith.constant 0 : i32
    return %1, %arg1 : i32, i32
  }
  func.func @transform_4(%arg0: i32, %arg1: i32, %arg2: i32) -> (i32, i32) {
    %c0_i32 = arith.constant 0 : i32
    %c0_i32_0 = arith.constant 0 : i32
    return %c0_i32, %arg1 : i32, i32
  }
  func.func @transform_5(%arg0: i32, %arg1: i32, %arg2: i32) -> (i32, i32) {
    %c0_i32 = arith.constant 0 : i32
    return %arg0, %arg1 : i32, i32
  }
}

</mosaic_0001>

<bundles_post_ra>
// kernel: tpu_custom_call.1
= control target key start
LH: loop header
LB: loop body
LE: loop exit
PB: predicated region body
PF: predicated region fallthrough
CT: control target
= control target key end

     0   :  { %10 = vsyncpa [#allocation4], 0  ;;  %s1296_s0 = inlined_call_operand.hbm [shape: f32[8,24], index: 0, kind: input, shape index: {}]   ;;  %s1297_s1 = inlined_call_operand.hbm [shape: f32[24,32], index: 1, kind: input, shape index: {}]   ;;  %s1298_s2 = inlined_call_operand.hbm [shape: f32[8,8], index: 2, kind: input, shape index: {}]   ;;  %s1299_s3 = inlined_call_operand.hbm [shape: f32[8,32], index: 3, kind: input, shape index: {}]   ;;  %s1300_s4 = inlined_call_operand.vmem [shape: f32[1,32], index: 4, kind: input, shape index: {}]   ;;  %s1301_s5 = inlined_call_operand.hbm [shape: f32[8,32], index: 5, kind: output, shape index: {}]  }
   0x1   :  { %12 = vsyncpa [#allocation4 + $0x1], 0 }
   0x2   :  { %13 = vsyncpa [#allocation7], 0 }
   0x3   :  { %15 = vsyncpa [#allocation7 + $0x1], 0 }
   0x4   :  { %16 = vsyncpa [#allocation10], 0 }
   0x5   :  { %18 = vsyncpa [#allocation10 + $0x1], 0 }
   0x6   :  { %19 = vsyncpa [#allocation5], 0  ;;  %s1096_s18 = smov 0   ;;  %s1098_s19 = smov 0  }
   0x7   :  { %s1100_s20 = smov 0   ;;  %s1102_s21 = smov 0  }
   0x8   :  { %s1104_s22 = smov 0   ;;  %s1106_s23 = smov 0  }
   0x9   :  { %s1108_s24 = smov 0  }
   0xa LB: > { %s37_s25 = sadd.s32 1, %s1053_s23  ;;  %p1029_p1 = scmp.ne.s32.totalorder %s1045_s21, 0  ;;  %s1057_s24 = sphi %s1108_s24, %s25_s24   ;;  %s1053_s23 = sphi %s1106_s23, %s1310_s23   ;;  %s1049_s22 = sphi %s1104_s22, %s1309_s22   ;;  %s1045_s21 = sphi %s1102_s21, %s1286_s21   ;;  %s1041_s20 = sphi %s1100_s20, %s1308_s20   ;;  %s1037_s19 = sphi %s1098_s19, %s1281_s19   ;;  %s1033_s18 = sphi %s1096_s18, %s1307_s18  }
   0xb   : > { %p38_p0 = scmp.ge.s32.totalorder %s37_s25, 2  ;;  %p65_p2 = scmp.eq.s32.totalorder %s1057_s24, 0 }
   0xc   : > { %p70_p3 = scmp.ne.s32.totalorder %s1045_s21, %s1041_s20  ;;  %p746_p5 = scmp.lt.s32.totalorder %s1057_s24, 2 }
   0xd   : > { %s1312_s25 = smov (%p38_p0, %s37_s25), 0  ;;  %p66_p4 = por %p1029_p1, %p65_p2 }
   0xe   : > { %s276_s26 = sand.u32 1, %s1057_s24   ;;  %s1059_s28 = smov [#allocation6]  }
   0xf   : > { %p1144_p6 = pnand %p746_p5, %p66_p4  ;;  %s291_s29 = sshll.u32 %s1059_s28, 4  ;;  %s292_s29 = int_to_ptr.vmem [resolvable:$true] %s291_s29 }
  0x10   : > { %s289_s7 = sshll.u32 %s1297_s1, 4  ;;  %p704_p7 = scmp.ge.s32.totalorder %s1057_s24, 1  ;;  %s290_s7 = int_to_ptr.hbm [resolvable:$true] %s289_s7 }
  0x11   : > { %p345_p8 = scmp.lt.s32.totalorder %s1057_s24, 3  ;;  %s1153_s8 = scalar_lea.sflag [#allocation7], %s276_s26 }
  0x12   : > { %s825_s9 = sshra.s32 %s290_s7, 4  ;;  %p829_p10 = pneg %p1144_p6  ;;  %s826_s9 = int_to_ptr.hbm [resolvable:$true] %s825_s9 }
  0x13   : > { %s827_s10 = scalar_lea.hbm %s826_s9, 24  ;;  %s832_s13 = scalar_lea.hbm %s1297_s1, 24 }
  0x14   : > { %p828_p9 = scmp.ne.s32.totalorder %s826_s9, %s827_s10  ;;  %p834_p13 = scmp.lt.s32.totalorder %s832_s13, %s827_s10 }
  0x16   : > { %p830_p11 = pnand %p829_p10, %p828_p9 }
  0x18   : > { %p831_p12 = pneg %p830_p11 }
  0x1a   : > { %p836_p0 = pnand %p834_p13, %p831_p12 }
  0x1c   : > { %839 = shalt.err (!%p836_p0)
}
  0x1d   : > { %s1060_s14 = smov 128   ;;  %s1061_s15 = smov 8  }
  0x1e   : > { %739 = dma.hbm_to_vmem [thread:$0]  (!%p1144_p6), %s290_s7, 384, %s292_s29, %s1153_s8, %s1060_s14, %s1060_s14, %s1061_s15  }
  0x1f   : > { %p1170_p1 = pnand %p704_p7, %p345_p8  ;;  %s267_s28 = sshll.u32 %s1296_s0, 4  ;;  %s268_s28 = int_to_ptr.hbm [resolvable:$true] %s267_s28 }
  0x20   : > { %s1062_s30 = smov [#allocation3]   ;;  %s855_s9 = sshra.s32 %s268_s28, 4  ;;  %s856_s9 = int_to_ptr.hbm [resolvable:$true] %s855_s9 }
  0x21   : > { %s269_s6 = sshll.u32 %s1062_s30, 4  ;;  %s857_s10 = scalar_lea.hbm %s856_s9, 8  ;;  %s270_s6 = int_to_ptr.vmem [resolvable:$true] %s269_s6 }
  0x22   : > { %p858_p4 = scmp.ne.s32.totalorder %s856_s9, %s857_s10  ;;  %s862_s11 = scalar_lea.hbm %s1296_s0, 8 }
  0x23   : > { %p864_p7 = scmp.lt.s32.totalorder %s862_s11, %s857_s10 }
  0x24   : > { %p860_p9 = pnand %p858_p4, %p829_p10 }
  0x26   : > { %p861_p11 = pneg %p860_p9 }
  0x28   : > { %p866_p8 = pnand %p864_p7, %p861_p11 }
  0x2a   : > { %869 = shalt.err (!%p866_p8)
}
  0x2b   : > { %736 = dma.hbm_to_vmem [thread:$0]  (!%p1144_p6), %s268_s28, 128, %s270_s6, [#allocation4]  }
  0x2c   : > { %s1186_s12 = sadd.s32 4294967295, %s1057_s24   ;;  %p1030_p13 = scmp.ne.s32.totalorder %s1037_s19, 0 }
  0x2d   : > { %p71_p10 = scmp.eq.s32.totalorder %s1186_s12, 0  ;;  %p136_p0 = scmp.ne.s32.totalorder %s1037_s19, %s1033_s18 }
  0x2e   : > { %p132_p4 = por %p1030_p13, %p65_p2  ;;  %s1063_s14 = smov [#allocation8]  }
  0x2f   : > { %p1192_p12 = por %p71_p10, %p70_p3  ;;  %p1201_p9 = por %p136_p0, %p71_p10 }
  0x30   : > { %s317_s15 = sshll.u32 %s1063_s14, 4  ;;  %s315_s28 = sshll.u32 %s1298_s2, 4  ;;  %s318_s15 = int_to_ptr.vmem [resolvable:$true] %s317_s15  ;;  %s316_s28 = int_to_ptr.hbm [resolvable:$true] %s315_s28 }
  0x31   : > { %p1210_p3 = pnand %p746_p5, %p132_p4  ;;  %s885_s18 = sshra.s32 %s316_s28, 4  ;;  %s886_s18 = int_to_ptr.hbm [resolvable:$true] %s885_s18 }
  0x32   : > { %s887_s30 = scalar_lea.hbm %s886_s18, 8  ;;  %p893_p8 = scmp.lt.s32.totalorder %s886_s18, %s1298_s2 }
  0x33   : > { %p888_p2 = scmp.ne.s32.totalorder %s886_s18, %s887_s30  ;;  %p889_p6 = pneg %p1210_p3 }
  0x35   : > { %p890_p11 = pnand %p889_p6, %p888_p2 }
  0x37   : > { %p891_p7 = pneg %p890_p11 }
  0x39   : > { %p896_p5 = pnand %p893_p8, %p891_p7 }
  0x3b   : > { %899 = shalt.err (!%p896_p5)
}
  0x3c   : > { %742 = dma.hbm_to_vmem [thread:$0]  (!%p1210_p3), %s316_s28, 128, %s318_s15, %s1153_s8  }
  0x3d   : > { %s338_s7 = sshll.u32 %s1299_s3, 4  ;;  %s1064_s11 = smov [#allocation9]   ;;  %s339_s7 = int_to_ptr.hbm [resolvable:$true] %s338_s7 }
  0x3e   : > { %s340_s14 = sshll.u32 %s1064_s11, 4  ;;  %s915_s17 = sshra.s32 %s339_s7, 4  ;;  %s341_s14 = int_to_ptr.vmem [resolvable:$true] %s340_s14  ;;  %s916_s17 = int_to_ptr.hbm [resolvable:$true] %s915_s17 }
  0x3f   : > { %s917_s26 = scalar_lea.hbm %s916_s17, 8  ;;  %p923_p4 = scmp.lt.s32.totalorder %s916_s17, %s1299_s3 }
  0x40   : > { %p918_p10 = scmp.ne.s32.totalorder %s916_s17, %s917_s26 }
  0x42   : > { %p920_p13 = pnand %p918_p10, %p889_p6 }
  0x44   : > { %p921_p0 = pneg %p920_p13 }
  0x46   : > { %p926_p2 = pnand %p923_p4, %p921_p0 }
  0x48   : > { %929 = shalt.err (!%p926_p2)
}
  0x49   : > { %745 = dma.hbm_to_vmem [thread:$0]  (!%p1210_p3), %s339_s7, 128, %s341_s14, [#allocation10]  }
  0x4a   : > { %349 = sbr.rel (%p1170_p1) target bundleno = 394 (0x18a), region = 40  ;;  %s351_s8 = sand.u32 (!%p1170_p1), 1, %s1045_s21  }
  0x4b   : > { %s705_s15 = sshll.u32 (!%p1170_p1), %s351_s8, 3  ;;  %s352_s28 = scalar_lea.sflag (!%p1170_p1), [#allocation4], %s351_s8 }
  0x4c   : > { %s1239_s6 = scalar_lea.vmem (!%p1170_p1), [#allocation3], %s705_s15 }
  0x4f   : > { %1010 = dma.done.wait (%p1192_p12), %s352_s28, 128  }
  0x50   : > { %1012 = vsyncadd (%p1192_p12), %s352_s28, 4294967168  ;;  %s361_s9 = sand.u32 1, %s1186_s12   ;;  %s720_s20 = smul.u32 24, %s351_s8 }
  0x51   : > { %s362_s10 = scalar_lea.sflag [#allocation7], %s361_s9 }
  0x52   : > { %s365_s29 = scalar_lea.vmem [#allocation6], %s720_s20 }
  0x53   : > { %1014 = dma.done.wait (%p1192_p12), %s362_s10, 384  }
  0x54   : > { %1016 = vsyncadd (%p1192_p12), %s362_s10, 4294966912  ;;  %s373_s16 = sand.u32 1, %s1037_s19  }
  0x55   : > { %s1251_s7 = sshll.u32 %s373_s16, 3 }
  0x56   : > { %s375_s11 = scalar_lea.vmem [#allocation8], %s1251_s7 }
  0x57   : > { %1018 = dma.done.wait (%p1201_p9), %s362_s10, 128  }
  0x58   : > { %1020 = vsyncadd (%p1201_p9), %s362_s10, 4294967168  ;;  %s382_s14 = scalar_lea.sflag [#allocation10], %s373_s16  ;;  %s385_s17 = scalar_lea.vmem [#allocation9], %s1251_s7 }
  0x59   : > { %1022 = dma.done.wait (%p1201_p9), %s382_s14, 128  }
  0x5a   : > { %1024 = vsyncadd (%p1201_p9), %s382_s14, 4294967168  ;;  %p708_p1 = scmp.ne.s32.totalorder %s1049_s22, 0 }
  0x5c   : > { %443 = sbr.rel (%p708_p1) target bundleno = 99 (0x63), region = 60 }
  0x61   : > { %v824_v0 = vld [vmem:[%s1300_s4] ss:$0 sm:$0xff]  ;;  %vm448_vm0 = vcmask 261120  }
  0x62   : > { %449 = vst.msk [vmem:[#allocation2] sm:$0xff] %vm448_vm0, %v824_v0 }
  0x63 PF: > { %p709_p12 = scmp.ge.s32.totalorder %s1049_s22, 1 }
  0x65   : > { %453 = sbr.rel (%p709_p12) target bundleno = 241 (0xf1), region = 64 }
  0x6a   : > { %v458_v1 = vld [vmem:[%s365_s29 + $0x10] sm:$0xff]  ;;  %v457_v2 = vld [vmem:[%s365_s29 + $0x8] sm:$0xff]  ;;  %v456_v3 = vld [vmem:[%s365_s29] sm:$0xff]  ;;  %vm459_vm1 = vcmask 195584   ;;  %vm484_vm2 = vcmask 261120  }
  0x6b   : > { %476 = vmatpush.msra.mxu0 %v458_v1  ;;  %v455_v4 = vld [vmem:[%s1239_s6] sm:$0xff]  ;;  %v454_v5 = vld [vmem:[#allocation2] sm:$0xff] }
  0x6d   : > { %477 = vmatpush.msra.mxu0 %v457_v2 }
  0x6f   : > { %478 = vmatpush.msra.mxu0 %v456_v3 }
  0x70   : > { %710 = vmatmul.msk.f32.vlgmr.msra.gmra.mxu0 %vm459_vm1, %v455_v4 }
  0xed   : > { %v480_v6 = vpop.f32.mrf.mxu0 }
  0xee   : > { %v483_v7 = vadd.f32 %v480_v6, %v454_v5 }
  0xf0   : > { %485 = vst.msk [vmem:[#allocation2] sm:$0xff] %vm484_vm2, %v483_v7 }
  0xf1 PF: > { %p711_p9 = scmp.lt.s32.totalorder %s1049_s22, 1 }
  0xf3   : > { %489 = sbr.rel (%p711_p9) target bundleno = 379 (0x17b), region = 68 }
  0xf8   : > { %v492_v8 = vld [vmem:[%s385_s17] sm:$0xff]  ;;  %v491_v9 = vld [vmem:[%s375_s11] sm:$0xff]  ;;  %vm493_vm3 = vcmask 64512   ;;  %vm518_vm4 = vcmask 261120  }
  0xf9   : > { %512 = vmatpush.msra.mxu0 %v492_v8  ;;  %v490_v10 = vld [vmem:[#allocation2] sm:$0xff] }
  0xfa   : > { %712 = vmatmul.msk.f32.vlgmr.msra.gmra.mxu0 %vm493_vm3, %v491_v9 }
 0x177   : > { %v514_v11 = vpop.f32.mrf.mxu0 }
 0x178   : > { %v517_v12 = vadd.f32 %v514_v11, %v490_v10 }
 0x17a   : > { %519 = vst.msk [vmem:[#allocation2] sm:$0xff] %vm518_vm4, %v517_v12 }
 0x17b PF: > { %p713_p3 = scmp.ne.s32.totalorder %s1049_s22, 1 }
 0x17d   : > { %523 = sbr.rel (%p713_p3) target bundleno = 388 (0x184), region = 72 }
 0x182   : > { %v524_v13 = vld [vmem:[#allocation2] sm:$0xff]  ;;  %vm525_vm5 = vcmask 261120  }
 0x183   : > { %526 = vst.msk [vmem:[#allocation11] sm:$0xff] %vm525_vm5, %v524_v13 }
 0x184 PF: > { %p747_p6 = scmp.eq.s32.totalorder %s1186_s12, 1  ;;  %s538_s30 = sshll.u32 %s1301_s5, 4  ;;  %s539_s30 = int_to_ptr.hbm [resolvable:$true] %s538_s30 }
 0x185   : > { %s1065_s8 = smov [#allocation11]  }
 0x186   : > { %s536_s15 = sshll.u32 %s1065_s8, 4  ;;  %s537_s15 = int_to_ptr.vmem [resolvable:$true] %s536_s15 }
 0x187   : > { %730 = dma.vmem_to_hbm [thread:$0]  (%p747_p6), %s537_s15, 128, %s539_s30, [#allocation5]  }
 0x188   : > { %1026 = dma.done.wait (%p747_p6), [#allocation5], 128  }
 0x189   : > { %1028 = vsyncadd (%p747_p6), [#allocation5], 4294967168 }
 0x18a PF: > { %s25_s24 = sadd.s32 1, %s1057_s24   ;;  %s1307_s18 = smov %s1037_s19 }
 0x18b   : > { %p22_p11 = scmp.ge.s32.totalorder %s25_s24, 4   ;;  %s1281_s19 = smov 0  }
 0x18c   : > { %s1308_s20 = smov %s1045_s21  ;;  %s1286_s21 = smov 0  }
 0x18d   : > { %s1309_s22 = smov %s1053_s23  ;;  %s1310_s23 = smov %s1312_s25 }
 0x18e   :  { %24 = sbr.rel (!%p22_p11) target bundleno = 10 (0xa), region = 134 }
 0x193   :  { %552 = vsyncpa [#allocation4], 1 }
 0x194   :  { %554 = vsyncpa [#allocation4 + $0x1], 1 }
 0x195   :  { %555 = vsyncpa [#allocation7], 1 }
 0x196   :  { %557 = vsyncpa [#allocation7 + $0x1], 1 }
 0x197   :  { %558 = vsyncpa [#allocation10], 1 }
 0x198   :  { %560 = vsyncpa [#allocation10 + $0x1], 1 }
 0x199   :  { %561 = vsyncpa [#allocation5], 1 }
 0x19a   :  { %563 = vsyncpa [#allocation5 + $0x1], 1 }

</bundles_post_ra>
